<compile_context>
chip_gen: v7x
topology: tpu7x:2x2x1
jax: 0.10.0
libtpu: 0.0.40
codegen_flags: <defaults>
</compile_context>

<pallas_src>
import functools

import jax
import jax.numpy as jnp
from jax.experimental import pallas as pl
from jax.experimental.pallas import tpu as pltpu


def rnn_forward_kernel(x_ref, wih_ref, whh_ref, b_pre_ref, wo_ref, bo_ref,
                       out_ref, pre_ref, *, seq_len, batch_pad, n_cls):
    # x_ref:    (seq*batch_pad, input_dim)  time-major rows, batch padded to 8
    # wih_ref:  (input_dim, h_pad)          pre-transposed, lane-padded W_ih
    # whh_ref:  (h_pad, h_pad)              pre-transposed, zero-padded W_hh
    # b_pre_ref:(1, h_pad)                  b_ih + b_hh (pre-summed, padded)
    # wo_ref:   (h_pad, out_pad)            pre-transposed, padded Linear weight
    # bo_ref:   (1, out_pad)
    # out_ref:  (batch_pad, out_pad)        lane-dense padded log-prob block
    # pre_ref:  VMEM scratch (seq*batch_pad, h_pad) for the hoisted projection

    # (1) Hoisted input projection: ONE MXU matmul covers every timestep
    #     (no recurrent dependence), recurrence bias folded in.  Staged in VMEM
    #     scratch so the loop reads static, tile-aligned ref slices.
    pre_ref[...] = (jnp.dot(x_ref[...], wih_ref[...],
                            preferred_element_type=jnp.float32)
                    + b_pre_ref[...])                    # (seq*bp, h_pad)

    w_hh = whh_ref[...]                                  # load once, stays in vregs

    # (2) Serial recurrence.  t=0 peeled: h_0 == 0 => h_1 = tanh(pre_0).
    h_t = jnp.tanh(pre_ref[0:batch_pad, :])              # (bp, h_pad)
    h_sum = h_t
    for t in range(1, seq_len):
        pre_t = pre_ref[t * batch_pad:(t + 1) * batch_pad, :]  # aligned 8-row slice
        h_t = jnp.tanh(pre_t + jnp.dot(h_t, w_hh,
                                       preferred_element_type=jnp.float32))
        h_sum = h_sum + h_t

    # (3) Hoisted output Linear: project the summed hidden state once
    #     (sum-then-project == project-then-sum for an affine layer; bias*seq).
    logits = (jnp.dot(h_sum, wo_ref[...], preferred_element_type=jnp.float32)
              + jnp.float32(seq_len) * bo_ref[...])      # (bp, out_pad)

    # Mask padded class lanes so they don't contribute to the log-sum-exp.
    lane = jax.lax.broadcasted_iota(jnp.int32, logits.shape, 1)
    logits = jnp.where(lane < n_cls, logits, jnp.float32(-1e30))

    # LogSoftmax over the class dim; full lane-dense unmasked store.
    m = jnp.max(logits, axis=-1, keepdims=True)
    lse = jnp.log(jnp.sum(jnp.exp(logits - m), axis=-1, keepdims=True)) + m
    out_ref[...] = logits - lse


def _pad_axis(a, target, axis):
    pad = [(0, 0)] * a.ndim
    pad[axis] = (0, target - a.shape[axis])
    return jnp.pad(a, pad)


def rnn_forward(inputs, params):
    """inputs: (seq, batch, input_dim) f32. Returns (batch, 5) log-probs."""
    seq, batch, input_dim = inputs.shape
    w_ih, w_hh, b_ih, b_hh, w_out, b_out = params
    h = w_ih.shape[0]
    n_cls = w_out.shape[0]

    # Padded layout: batch -> multiple of 8 sublanes, hidden/classes -> 128 lanes.
    batch_pad = max(8, ((batch + 7) // 8) * 8)
    h_pad = max(128, ((h + 127) // 128) * 128)
    out_pad = max(128, ((n_cls + 127) // 128) * 128)

    # Wrapper-side glue: pad batch rows with zeros, flatten time into rows,
    # pre-transpose + zero-pad weights, fold the two recurrence biases into one.
    x = jnp.asarray(inputs, jnp.float32)
    x = _pad_axis(x, batch_pad, axis=1)                        # (seq, bp, in)
    x2 = x.reshape(seq * batch_pad, input_dim)

    w_ih_t = _pad_axis(jnp.asarray(w_ih.T, jnp.float32), h_pad, 1)      # (in, h_pad)
    w_hh_t = _pad_axis(_pad_axis(jnp.asarray(w_hh.T, jnp.float32),
                                 h_pad, 0), h_pad, 1)                   # (h_pad, h_pad)
    b_pre = _pad_axis(jnp.asarray((b_ih + b_hh).reshape(1, h),
                                  jnp.float32), h_pad, 1)               # (1, h_pad)
    w_out_t = _pad_axis(_pad_axis(jnp.asarray(w_out.T, jnp.float32),
                                  h_pad, 0), out_pad, 1)                # (h_pad, out_pad)
    b_out2 = _pad_axis(jnp.asarray(b_out.reshape(1, n_cls),
                                   jnp.float32), out_pad, 1)            # (1, out_pad)

    vmem = pl.BlockSpec(memory_space=pltpu.MemorySpace.VMEM)
    kernel = functools.partial(rnn_forward_kernel, seq_len=seq,
                               batch_pad=batch_pad, n_cls=n_cls)

    out_padded = pl.pallas_call(
        kernel,
        out_shape=jax.ShapeDtypeStruct((batch_pad, out_pad), jnp.float32),
        in_specs=[vmem] * 6,
        out_specs=vmem,
        scratch_shapes=[pltpu.VMEM((seq * batch_pad, h_pad), jnp.float32)],
    )(x2, w_ih_t, w_hh_t, b_pre, w_out_t, b_out2)

    # Slice padded batch rows / class lanes back to the real problem size.
    return out_padded[:batch, :n_cls]


def init_params(key, input_dim, h, n_cls=5):
    # Deterministic init mimicking PyTorch's uniform(-1/sqrt(h), 1/sqrt(h)).
    ks = jax.random.split(key, 6)
    bound = 1.0 / jnp.sqrt(jnp.float32(h))
    w_ih = jax.random.uniform(ks[0], (h, input_dim), jnp.float32, -bound, bound)
    w_hh = jax.random.uniform(ks[1], (h, h), jnp.float32, -bound, bound)
    b_ih = jax.random.uniform(ks[2], (h,), jnp.float32, -bound, bound)
    b_hh = jax.random.uniform(ks[3], (h,), jnp.float32, -bound, bound)
    w_out = jax.random.uniform(ks[4], (n_cls, h), jnp.float32, -bound, bound)
    b_out = jax.random.uniform(ks[5], (n_cls,), jnp.float32, -bound, bound)
    return (w_ih, w_hh, b_ih, b_hh, w_out, b_out)


if __name__ == "__main__":
    seq, batch, input_dim, hidden = 8, 2, 16, 32
    key = jax.random.PRNGKey(0)
    k_x, k_p = jax.random.split(key)
    x = jax.random.normal(k_x, (seq, batch, input_dim), jnp.float32)
    params = init_params(k_p, input_dim, hidden)

    out = rnn_forward(x, params)
    out = jax.block_until_ready(out)

    # Pure-JAX reference (matches the PyTorch forward semantics).
    w_ih, w_hh, b_ih, b_hh, w_out, b_out = params

    def ref(x):
        h_t = jnp.zeros((batch, hidden), jnp.float32)
        acc = jnp.zeros((batch, 5), jnp.float32)
        for t in range(seq):
            h_t = jnp.tanh(x[t] @ w_ih.T + b_ih + h_t @ w_hh.T + b_hh)
            acc = acc + (h_t @ w_out.T + b_out)
        return jax.nn.log_softmax(acc, axis=-1)

    ref_out = ref(x)
    assert out.shape == (batch, 5), out.shape
    assert jnp.allclose(out, ref_out, atol=2e-5), (out, ref_out)

    print("KERNEL_OK")
</pallas_src>

<mosaic_0001>
module attributes {stable_mosaic.version = 11 : i64} {
  func.func @rnn_forward_kernel(%arg0: memref<64x16xf32, #tpu.memory_space<vmem>>, %arg1: memref<16x128xf32, #tpu.memory_space<vmem>>, %arg2: memref<128x128xf32, #tpu.memory_space<vmem>>, %arg3: memref<1x128xf32, #tpu.memory_space<vmem>>, %arg4: memref<128x128xf32, #tpu.memory_space<vmem>>, %arg5: memref<1x128xf32, #tpu.memory_space<vmem>>, %arg6: memref<8x128xf32, #tpu.memory_space<vmem>>, %arg7: memref<64x128xf32, #tpu.memory_space<vmem>>) attributes {dimension_semantics = [], scalar_prefetch = 0 : i64, scratch_operands = 1 : i64, tpu.core_type = #tpu.core_type<tc>} {
    %c0 = arith.constant 0 : index
    %c0_0 = arith.constant 0 : index
    %0 = vector.load %arg0[%c0, %c0_0] : memref<64x16xf32, #tpu.memory_space<vmem>>, vector<64x16xf32>
    %c0_1 = arith.constant 0 : index
    %c0_2 = arith.constant 0 : index
    %1 = vector.load %arg1[%c0_1, %c0_2] : memref<16x128xf32, #tpu.memory_space<vmem>>, vector<16x128xf32>
    %cst = arith.constant dense<0.000000e+00> : vector<64x128xf32>
    %2 = tpu.matmul %0, %1, %cst {dimension_numbers = #tpu.dot_dimension_numbers<[1], [0], [0], [1], [0, 0, 1, 1], [], []>} : vector<64x16xf32>, vector<16x128xf32>, vector<64x128xf32> -> vector<64x128xf32>
    %c0_3 = arith.constant 0 : index
    %c0_4 = arith.constant 0 : index
    %3 = vector.load %arg3[%c0_3, %c0_4] : memref<1x128xf32, #tpu.memory_space<vmem>>, vector<1x128xf32>
    %4 = vector.broadcast %3 : vector<1x128xf32> to vector<64x128xf32>
    %5 = arith.addf %2, %4 : vector<64x128xf32>
    %c0_5 = arith.constant 0 : index
    %c0_6 = arith.constant 0 : index
    %6 = vector.load %arg7[%c0_5, %c0_6] : memref<64x128xf32, #tpu.memory_space<vmem>>, vector<64x128xf32>
    tpu.vector_store %arg7[%c0_5, %c0_6], %5 {strides = array<i32>} : memref<64x128xf32, #tpu.memory_space<vmem>>, vector<64x128xf32>,
    %c0_7 = arith.constant 0 : index
    %c0_8 = arith.constant 0 : index
    %7 = vector.load %arg2[%c0_7, %c0_8] : memref<128x128xf32, #tpu.memory_space<vmem>>, vector<128x128xf32>
    %c0_9 = arith.constant 0 : index
    %c0_10 = arith.constant 0 : index
    %8 = vector.load %arg7[%c0_9, %c0_10] : memref<64x128xf32, #tpu.memory_space<vmem>>, vector<8x128xf32>
    %9 = math.tanh %8 : vector<8x128xf32>
    %c8 = arith.constant 8 : index
    %c0_11 = arith.constant 0 : index
    %10 = vector.load %arg7[%c8, %c0_11] : memref<64x128xf32, #tpu.memory_space<vmem>>, vector<8x128xf32>
    %cst_12 = arith.constant dense<0.000000e+00> : vector<8x128xf32>
    %11 = tpu.matmul %9, %7, %cst_12 {dimension_numbers = #tpu.dot_dimension_numbers<[1], [0], [0], [1], [0, 0, 1, 1], [], []>} : vector<8x128xf32>, vector<128x128xf32>, vector<8x128xf32> -> vector<8x128xf32>
    %12 = arith.addf %10, %11 : vector<8x128xf32>
    %13 = math.tanh %12 : vector<8x128xf32>
    %14 = arith.addf %9, %13 : vector<8x128xf32>
    %c16 = arith.constant 16 : index
    %c0_13 = arith.constant 0 : index
    %15 = vector.load %arg7[%c16, %c0_13] : memref<64x128xf32, #tpu.memory_space<vmem>>, vector<8x128xf32>
    %cst_14 = arith.constant dense<0.000000e+00> : vector<8x128xf32>
    %16 = tpu.matmul %13, %7, %cst_14 {dimension_numbers = #tpu.dot_dimension_numbers<[1], [0], [0], [1], [0, 0, 1, 1], [], []>} : vector<8x128xf32>, vector<128x128xf32>, vector<8x128xf32> -> vector<8x128xf32>
    %17 = arith.addf %15, %16 : vector<8x128xf32>
    %18 = math.tanh %17 : vector<8x128xf32>
    %19 = arith.addf %14, %18 : vector<8x128xf32>
    %c24 = arith.constant 24 : index
    %c0_15 = arith.constant 0 : index
    %20 = vector.load %arg7[%c24, %c0_15] : memref<64x128xf32, #tpu.memory_space<vmem>>, vector<8x128xf32>
    %cst_16 = arith.constant dense<0.000000e+00> : vector<8x128xf32>
    %21 = tpu.matmul %18, %7, %cst_16 {dimension_numbers = #tpu.dot_dimension_numbers<[1], [0], [0], [1], [0, 0, 1, 1], [], []>} : vector<8x128xf32>, vector<128x128xf32>, vector<8x128xf32> -> vector<8x128xf32>
    %22 = arith.addf %20, %21 : vector<8x128xf32>
    %23 = math.tanh %22 : vector<8x128xf32>
    %24 = arith.addf %19, %23 : vector<8x128xf32>
    %c32 = arith.constant 32 : index
    %c0_17 = arith.constant 0 : index
    %25 = vector.load %arg7[%c32, %c0_17] : memref<64x128xf32, #tpu.memory_space<vmem>>, vector<8x128xf32>
    %cst_18 = arith.constant dense<0.000000e+00> : vector<8x128xf32>
    %26 = tpu.matmul %23, %7, %cst_18 {dimension_numbers = #tpu.dot_dimension_numbers<[1], [0], [0], [1], [0, 0, 1, 1], [], []>} : vector<8x128xf32>, vector<128x128xf32>, vector<8x128xf32> -> vector<8x128xf32>
    %27 = arith.addf %25, %26 : vector<8x128xf32>
    %28 = math.tanh %27 : vector<8x128xf32>
    %29 = arith.addf %24, %28 : vector<8x128xf32>
    %c40 = arith.constant 40 : index
    %c0_19 = arith.constant 0 : index
    %30 = vector.load %arg7[%c40, %c0_19] : memref<64x128xf32, #tpu.memory_space<vmem>>, vector<8x128xf32>
    %cst_20 = arith.constant dense<0.000000e+00> : vector<8x128xf32>
    %31 = tpu.matmul %28, %7, %cst_20 {dimension_numbers = #tpu.dot_dimension_numbers<[1], [0], [0], [1], [0, 0, 1, 1], [], []>} : vector<8x128xf32>, vector<128x128xf32>, vector<8x128xf32> -> vector<8x128xf32>
    %32 = arith.addf %30, %31 : vector<8x128xf32>
    %33 = math.tanh %32 : vector<8x128xf32>
    %34 = arith.addf %29, %33 : vector<8x128xf32>
    %c48 = arith.constant 48 : index
    %c0_21 = arith.constant 0 : index
    %35 = vector.load %arg7[%c48, %c0_21] : memref<64x128xf32, #tpu.memory_space<vmem>>, vector<8x128xf32>
    %cst_22 = arith.constant dense<0.000000e+00> : vector<8x128xf32>
    %36 = tpu.matmul %33, %7, %cst_22 {dimension_numbers = #tpu.dot_dimension_numbers<[1], [0], [0], [1], [0, 0, 1, 1], [], []>} : vector<8x128xf32>, vector<128x128xf32>, vector<8x128xf32> -> vector<8x128xf32>
    %37 = arith.addf %35, %36 : vector<8x128xf32>
    %38 = math.tanh %37 : vector<8x128xf32>
    %39 = arith.addf %34, %38 : vector<8x128xf32>
    %c56 = arith.constant 56 : index
    %c0_23 = arith.constant 0 : index
    %40 = vector.load %arg7[%c56, %c0_23] : memref<64x128xf32, #tpu.memory_space<vmem>>, vector<8x128xf32>
    %cst_24 = arith.constant dense<0.000000e+00> : vector<8x128xf32>
    %41 = tpu.matmul %38, %7, %cst_24 {dimension_numbers = #tpu.dot_dimension_numbers<[1], [0], [0], [1], [0, 0, 1, 1], [], []>} : vector<8x128xf32>, vector<128x128xf32>, vector<8x128xf32> -> vector<8x128xf32>
    %42 = arith.addf %40, %41 : vector<8x128xf32>
    %43 = math.tanh %42 : vector<8x128xf32>
    %44 = arith.addf %39, %43 : vector<8x128xf32>
    %c0_25 = arith.constant 0 : index
    %c0_26 = arith.constant 0 : index
    %45 = vector.load %arg4[%c0_25, %c0_26] : memref<128x128xf32, #tpu.memory_space<vmem>>, vector<128x128xf32>
    %cst_27 = arith.constant dense<0.000000e+00> : vector<8x128xf32>
    %46 = tpu.matmul %44, %45, %cst_27 {dimension_numbers = #tpu.dot_dimension_numbers<[1], [0], [0], [1], [0, 0, 1, 1], [], []>} : vector<8x128xf32>, vector<128x128xf32>, vector<8x128xf32> -> vector<8x128xf32>
    %c0_28 = arith.constant 0 : index
    %c0_29 = arith.constant 0 : index
    %47 = vector.load %arg5[%c0_28, %c0_29] : memref<1x128xf32, #tpu.memory_space<vmem>>, vector<1x128xf32>
    %cst_30 = arith.constant 8.000000e+00 : f32
    %48 = vector.broadcast %cst_30 : f32 to vector<1x128xf32>
    %49 = arith.mulf %48, %47 : vector<1x128xf32>
    %50 = vector.broadcast %49 : vector<1x128xf32> to vector<8x128xf32>
    %51 = arith.addf %46, %50 : vector<8x128xf32>
    %52 = tpu.iota {dimensions = array<i32: 1>} : vector<8x128xi32>
    %c5_i32 = arith.constant 5 : i32
    %53 = vector.broadcast %c5_i32 : i32 to vector<8x128xi32>
    %54 = arith.cmpi slt, %52, %53 : vector<8x128xi32>
    %cst_31 = arith.constant -1.000000e+30 : f32
    %55 = vector.broadcast %cst_31 : f32 to vector<8x128xf32>
    %56 = arith.select %54, %51, %55 : vector<8x128xi1>, vector<8x128xf32>
    %cst_32 = arith.constant dense<0xFF800000> : vector<8xf32>
    %57 = vector.multi_reduction <maximumf>, %56, %cst_32 [1] : vector<8x128xf32> to vector<8xf32>
    %58 = vector.shape_cast %57 : vector<8xf32> to vector<8x1xf32>
    %59 = vector.broadcast %58 : vector<8x1xf32> to vector<8x128xf32>
    %60 = arith.subf %56, %59 : vector<8x128xf32>
    %61 = math.exp %60 : vector<8x128xf32>
    %cst_33 = arith.constant dense<0.000000e+00> : vector<8xf32>
    %62 = vector.multi_reduction <add>, %61, %cst_33 [1] : vector<8x128xf32> to vector<8xf32>
    %63 = vector.shape_cast %62 : vector<8xf32> to vector<8x1xf32>
    %64 = math.log %63 : vector<8x1xf32>
    %65 = arith.addf %64, %58 : vector<8x1xf32>
    %66 = vector.broadcast %65 : vector<8x1xf32> to vector<8x128xf32>
    %67 = arith.subf %56, %66 : vector<8x128xf32>
    %c0_34 = arith.constant 0 : index
    %c0_35 = arith.constant 0 : index
    %68 = vector.load %arg6[%c0_34, %c0_35] : memref<8x128xf32, #tpu.memory_space<vmem>>, vector<8x128xf32>
    tpu.vector_store %arg6[%c0_34, %c0_35], %67 {strides = array<i32>} : memref<8x128xf32, #tpu.memory_space<vmem>>, vector<8x128xf32>,
    return
  }
}

</mosaic_0001>

<bundles_post_ra>
// kernel: tpu_custom_call.1
= control target key start
LH: loop header
LB: loop body
LE: loop exit
PB: predicated region body
PF: predicated region fallthrough
CT: control target
= control target key end

     0   :  { %11 = vsyncpa [#allocation4], 0  ;;  %s1914_s0 = inlined_call_operand.vmem [shape: f32[64,16], index: 0, kind: input, shape index: {}]   ;;  %s1915_s1 = inlined_call_operand.vmem [shape: f32[16,128], index: 1, kind: input, shape index: {}]   ;;  %s1916_s2 = inlined_call_operand.hbm [shape: f32[128,128], index: 2, kind: input, shape index: {}]   ;;  %s1917_s3 = inlined_call_operand.vmem [shape: f32[1,128], index: 3, kind: input, shape index: {}]   ;;  %s1918_s4 = inlined_call_operand.hbm [shape: f32[128,128], index: 4, kind: input, shape index: {}]   ;;  %s1919_s5 = inlined_call_operand.vmem [shape: f32[1,128], index: 5, kind: input, shape index: {}]   ;;  %s1920_s6 = inlined_call_operand.hbm [shape: f32[8,128], index: 6, kind: output, shape index: {}]  }
   0x1   :  { %12 = vsyncpa [#allocation7], 0 }
   0x2   :  { %13 = vsyncpa [#allocation5], 0  ;;  %s1616_s21 = smov [#allocation3]   ;;  %s1544_s25 = scalar_lea.hbm %s1916_s2, 2048 }
   0x3   :  { %s23_s22 = sshll.u32 %s1616_s21, 4  ;;  %p1545_p0 = scmp.ne.s32.totalorder %s1916_s2, %s1544_s25  ;;  %s24_s22 = int_to_ptr.vmem [resolvable:$true] %s23_s22 }
   0x4   :  { %p1548_p1 = scmp.lt.u32.totalorder %s1544_s25, %s1916_s2 }
   0x6   :  { %p1550_p2 = pnand %p1548_p1, %p1545_p0 }
   0x8   :  { %1553 = shalt.err (!%p1550_p2)
}
   0x9   :  { %s1554_s30 = scalar_lea.vmem %s24_s22, 2048  ;;  %p1559_p4 = scmp.lt.s32.totalorder %s24_s22, %s24_s22 }
   0xa   :  { %p1555_p3 = scmp.ne.s32.totalorder %s24_s22, %s1554_s30  ;;  %p1560_p5 = scmp.lt.s32.totalorder %s1554_s30, %s1554_s30 }
   0xc   :  { %p1561_p6 = por %p1560_p5, %p1559_p4 }
   0xe   :  { %p1562_p7 = pnand %p1561_p6, %p1555_p3 }
  0x10   :  { %1565 = shalt.err (!%p1562_p7)
}
  0x11   :  { %s1617_s7 = smov 128   ;;  %s1618_s8 = smov 8  }
  0x12   :  { %29 = dma.hbm_to_vmem [thread:$0]  %s1916_s2, 2048, %s24_s22, [#allocation4], %s1617_s7, %s1617_s7, %s1618_s8  }
  0x13   :  { %s1619_s11 = smov [#allocation6]   ;;  %s1566_s15 = scalar_lea.hbm %s1918_s4, 2048 }
  0x14   :  { %s37_s12 = sshll.u32 %s1619_s11, 4  ;;  %p1567_p8 = scmp.ne.s32.totalorder %s1918_s4, %s1566_s15  ;;  %s38_s12 = int_to_ptr.vmem [resolvable:$true] %s37_s12 }
  0x15   :  { %p1570_p9 = scmp.lt.u32.totalorder %s1566_s15, %s1918_s4 }
  0x17   :  { %p1572_p10 = pnand %p1570_p9, %p1567_p8 }
  0x19   :  { %1575 = shalt.err (!%p1572_p10)
}
  0x1a   :  { %s1576_s20 = scalar_lea.vmem %s38_s12, 2048  ;;  %p1581_p12 = scmp.lt.s32.totalorder %s38_s12, %s38_s12 }
  0x1b   :  { %p1577_p11 = scmp.ne.s32.totalorder %s38_s12, %s1576_s20  ;;  %p1582_p13 = scmp.lt.s32.totalorder %s1576_s20, %s1576_s20 }
  0x1d   :  { %p1583_p0 = por %p1582_p13, %p1581_p12 }
  0x1f   :  { %p1584_p1 = pnand %p1583_p0, %p1577_p11 }
  0x21   :  { %1587 = shalt.err (!%p1584_p1)
}
  0x22   :  { %43 = dma.hbm_to_vmem [thread:$0]  %s1918_s4, 2048, %s38_s12, [#allocation7], %s1617_s7, %s1617_s7, %s1618_s8  }
  0x23   :  { %1610 = dma.done.wait [#allocation4], 2048  }
  0x24   :  { %1611 = vsyncadd [#allocation4], 4294965248 }
  0x25   :  { %1612 = dma.done.wait [#allocation7], 2048  }
  0x26   :  { %1613 = vsyncadd [#allocation7], 4294965248  ;;  %v1620_v0 = vmov 0.0|0.0   ;;  %vm69_vm0 = vcmask 130048   ;;  %v60_v1 = vld [vmem:[%s1915_s1] sm:$0xff]  ;;  %v61_v2 = vld [vmem:[%s1915_s1 + $0x8] sm:$0xff] }
  0x27   :  { %1324 = vmatprep.subr.bf16.mxu1 %v1620_v0  ;;  %v52_v3 = vld [vmem:[%s1914_s0] sm:$0xff]  ;;  %v1320_v4 = vpack.c.bf16 %v61_v2, %v60_v1  ;;  %v208_v6 = vld [vmem:[#allocation3 + $0x8] sm:$0xff]  ;;  %v209_v8 = vld [vmem:[#allocation3 + $0x10] sm:$0xff]  ;;  %vm1621_vm1 = vmmov 0   ;;  %v1622_v29 = vmov 0.0  }
  0x28   :  { %1028 = vmatprep.mubr.msk.f32.mxu0 %vm69_vm0, %v52_v3  ;;  %v207_v5 = vld [vmem:[#allocation3] sm:$0xff]  ;;  %v210_v9 = vld [vmem:[#allocation3 + $0x18] sm:$0xff]  ;;  %v53_v10 = vld [vmem:[%s1914_s0 + $0x8] sm:$0xff]  ;;  %1072 = vmatprep.mubr.msk.f32.mxu1 %vm1621_vm1, %v1622_v29 }
  0x29   :  { %v1694_v7 = vpack.c.bf16 %v208_v6, %v207_v5  ;;  %1321 = vmatprep.subr.bf16.mxu0 %v1320_v4  ;;  %v1700_v11 = vpack.c.bf16 %v210_v9, %v209_v8  ;;  %v211_v12 = vld [vmem:[#allocation3 + $0x20] sm:$0xff]  ;;  %v212_v13 = vld [vmem:[#allocation3 + $0x28] sm:$0xff]  ;;  %v213_v15 = vld [vmem:[#allocation3 + $0x30] sm:$0xff] }
  0x2a   :  { %1323 = vmatpush3.bf16.msra.mxu0 %v1320_v4  ;;  %v1706_v14 = vpack.c.bf16 %v212_v13, %v211_v12  ;;  %v214_v16 = vld [vmem:[#allocation3 + $0x38] sm:$0xff]  ;;  %v215_v18 = vld [vmem:[#allocation3 + $0x40] sm:$0xff]  ;;  %v216_v19 = vld [vmem:[#allocation3 + $0x48] sm:$0xff] }
  0x2b   :  { %1326 = vmatpush3.bf16.msra.mxu1 %v1694_v7  ;;  %1348 = vmatprep.subr.bf16.mxu0 %v1620_v0  ;;  %v1712_v17 = vpack.c.bf16 %v214_v16, %v213_v15  ;;  %v1723_v20 = vpack.c.bf16 %v216_v19, %v215_v18  ;;  %v217_v21 = vld [vmem:[#allocation3 + $0x50] sm:$0xff]  ;;  %v218_v22 = vld [vmem:[#allocation3 + $0x58] sm:$0xff]  ;;  %v219_v24 = vld [vmem:[#allocation3 + $0x60] sm:$0xff] }
  0x2c   :  { %1327 = vmatprep.subr.bf16.mxu1 %v1620_v0  ;;  %v1729_v23 = vpack.c.bf16 %v218_v22, %v217_v21  ;;  %v220_v25 = vld [vmem:[#allocation3 + $0x68] sm:$0xff]  ;;  %v221_v27 = vld [vmem:[#allocation3 + $0x70] sm:$0xff]  ;;  %v222_v28 = vld [vmem:[#allocation3 + $0x78] sm:$0xff] }
  0x2d   :  { %1029 = vmatmul.mubr.msk.f32.vlgmr.msra.gmra.mrb[0].mxu0 %vm69_vm0, %v53_v10  ;;  %v1734_v26 = vpack.c.bf16 %v220_v25, %v219_v24  ;;  %v1740_v30 = vpack.c.bf16 %v222_v28, %v221_v27  ;;  %v54_v31 = vld [vmem:[%s1914_s0 + $0x10] sm:$0xff]  ;;  %v1756_v32 = vld [vmem:[%s1917_s3] ss:$0 sm:$0xff]  ;;  %v55_v37 = vld [vmem:[%s1914_s0 + $0x18] sm:$0xff] }
  0x2e   :  { %1350 = vmatpush3.bf16.msra.mxu0 %v1694_v7  ;;  %1031 = vmatprep.mubr.msk.f32.mxu0 %vm69_vm0, %v54_v31  ;;  %v56_v38 = vld [vmem:[%s1914_s0 + $0x20] sm:$0xff]  ;;  %v57_v39 = vld [vmem:[%s1914_s0 + $0x28] sm:$0xff]  ;;  %v58_v40 = vld [vmem:[%s1914_s0 + $0x30] sm:$0xff] }
  0x2f   :  { %1329 = vmatpush3.bf16.msra.mxu1 %v1700_v11  ;;  %1351 = vmatprep.subr.bf16.mxu0 %v1620_v0  ;;  %v59_v41 = vld [vmem:[%s1914_s0 + $0x38] sm:$0xff]  ;;  %v743_v15 = vld [vmem:[#allocation6] sm:$0xff]  ;;  %v744_v16 = vld [vmem:[#allocation6 + $0x8] sm:$0xff] }
  0x30   :  { %1330 = vmatprep.subr.bf16.mxu1 %v1620_v0  ;;  %v1493_v18 = vpack.c.bf16 %v744_v16, %v743_v15  ;;  %v746_v19 = vld [vmem:[#allocation6 + $0x18] sm:$0xff]  ;;  %v747_v21 = vld [vmem:[#allocation6 + $0x20] sm:$0xff]  ;;  %v748_v22 = vld [vmem:[#allocation6 + $0x28] sm:$0xff] }
  0x31   :  { %1032 = vmatmul.mubr.msk.f32.gmra.mrb[2].mxu0 %vm69_vm0, %v55_v37  ;;  %v749_v24 = vld [vmem:[#allocation6 + $0x30] sm:$0xff]  ;;  %v750_v25 = vld [vmem:[#allocation6 + $0x38] sm:$0xff] }
  0x32   :  { %1353 = vmatpush3.bf16.msra.mxu0 %v1700_v11  ;;  %1034 = vmatprep.mubr.msk.f32.mxu0 %vm69_vm0, %v56_v38  ;;  %v753_v37 = vld [vmem:[#allocation6 + $0x50] sm:$0xff]  ;;  %v754_v38 = vld [vmem:[#allocation6 + $0x58] sm:$0xff] }
  0x33   :  { %1332 = vmatpush3.bf16.msra.mxu1 %v1706_v14  ;;  %1354 = vmatprep.subr.bf16.mxu0 %v1620_v0 }
  0x34   :  { %1333 = vmatprep.subr.bf16.mxu1 %v1620_v0 }
  0x35   :  { %1035 = vmatmul.mubr.msk.f32.gmra.mrb[4].mxu0 %vm69_vm0, %v57_v39  ;;  %v1508_v39 = vpack.c.bf16 %v754_v38, %v753_v37 }
  0x36   :  { %1356 = vmatpush3.bf16.msra.mxu0 %v1706_v14  ;;  %1037 = vmatprep.mubr.msk.f32.mxu0 %vm69_vm0, %v58_v40  ;;  %v755_v40 = vld [vmem:[#allocation6 + $0x60] sm:$0xff] }
  0x37   :  { %1335 = vmatpush3.bf16.msra.mxu1 %v1712_v17  ;;  %1357 = vmatprep.subr.bf16.mxu0 %v1620_v0 }
  0x38   :  { %1336 = vmatprep.subr.bf16.mxu1 %v1620_v0 }
  0x39   :  { %1038 = vmatmul.mubr.msk.f32.gmra.mrb[6].mxu0 %vm69_vm0, %v59_v41  ;;  %v756_v41 = vld [vmem:[#allocation6 + $0x68] sm:$0xff] }
  0x3a   :  { %1359 = vmatpush3.bf16.msra.mxu0 %v1712_v17  ;;  %1107 = vmatprep.mubr.msk.f32.mxu0 %vm1621_vm1, %v1622_v29 }
  0x3b   :  { %1360 = vmatprep.subr.bf16.mxu0 %v1620_v0  ;;  %1338 = vmatpush3.bf16.msra.mxu1 %v1723_v20 }
  0x3c   :  { %1339 = vmatprep.subr.bf16.mxu1 %v1620_v0 }
  0x3e   :  { %1362 = vmatpush3.bf16.msra.mxu0 %v1723_v20 }
  0x3f   :  { %1363 = vmatprep.subr.bf16.mxu0 %v1620_v0  ;;  %1341 = vmatpush3.bf16.msra.mxu1 %v1729_v23 }
  0x40   :  { %1342 = vmatprep.subr.bf16.mxu1 %v1620_v0 }
  0x42   :  { %1365 = vmatpush3.bf16.msra.mxu0 %v1729_v23 }
  0x43   :  { %1366 = vmatprep.subr.bf16.mxu0 %v1620_v0  ;;  %1344 = vmatpush3.bf16.msra.mxu1 %v1734_v26 }
  0x44   :  { %1345 = vmatprep.subr.bf16.mxu1 %v1620_v0 }
  0x46   :  { %1368 = vmatpush3.bf16.msra.mxu0 %v1734_v26 }
  0x47   :  { %1369 = vmatprep.subr.bf16.mxu0 %v1620_v0  ;;  %1347 = vmatpush3.bf16.msra.mxu1 %v1740_v30 }
  0x48   :  { %1372 = vmatprep.subr.bf16.mxu1 %v1620_v0 }
  0x4a   :  { %1371 = vmatpush3.bf16.msra.mxu0 %v1740_v30 }
  0x4b   :  { %1396 = vmatprep.subr.bf16.mxu0 %v1620_v0 }
 0x100   :  { %v1030_v33 = vpop.f32.mrb[0].mxu0 }
 0x101   :  { %v160_v34 = vpop.f32.mrb[1].mxu0  ;;  %v166_v42 = vadd.f32 %v1030_v33, %v1756_v32 }
 0x102   :  { %v161_v35 = vadd.f32 %v1756_v32, %v160_v34  ;;  %v751_v34 = vld [vmem:[#allocation6 + $0x40] sm:$0xff] }
 0x104   :  { %1524 = vtanh.f32 %v161_v35  ;;  %v1033_v47 = vpop.f32.mrb[2].mxu0  ;;  %v752_v35 = vld [vmem:[#allocation6 + $0x48] sm:$0xff] }
 0x105   :  { %v170_v48 = vpop.f32.mrb[3].mxu0  ;;  %v176_v60 = vadd.f32 %v1033_v47, %v1756_v32 }
 0x106   :  { %v171_v53 = vadd.f32 %v1756_v32, %v170_v48 }
 0x108   :  { %v1821_v49 = vpop.f32.mrb[4].mxu0 }
 0x109   :  { %v180_v50 = vpop.f32.mrb[5].mxu0 }
 0x10a   :  { %v181_v3 = vadd.f32 %v1756_v32, %v180_v50 }
 0x10c   :  { %v1823_v51 = vpop.f32.mrb[6].mxu0 }
 0x10d   :  { %v1825_v52 = vpop.f32.mrb[7].mxu0 }
 0x10e   :  { %v1759_v36 = vpop.eup %1524  ;;  %v191_v27 = vadd.f32 %v1756_v32, %v1825_v52 }
 0x10f   :  { %1073 = vmatmul.mubr.f32.vlgmr.msra.gmra.mrb[0].mxu1 %v1759_v36 }
 0x110   :  { %1374 = vmatpush3.bf16.msra.mxu1 %v1694_v7  ;;  %1142 = vmatprep.mubr.msk.f32.mxu1 %vm1621_vm1, %v1622_v29 }
 0x111   :  { %1375 = vmatprep.subr.bf16.mxu1 %v1620_v0 }
 0x114   :  { %1377 = vmatpush3.bf16.msra.mxu1 %v1700_v11 }
 0x115   :  { %1378 = vmatprep.subr.bf16.mxu1 %v1620_v0 }
 0x118   :  { %1380 = vmatpush3.bf16.msra.mxu1 %v1706_v14 }
 0x119   :  { %1381 = vmatprep.subr.bf16.mxu1 %v1620_v0 }
 0x11c   :  { %1383 = vmatpush3.bf16.msra.mxu1 %v1712_v17 }
 0x11d   :  { %1384 = vmatprep.subr.bf16.mxu1 %v1620_v0 }
 0x120   :  { %1386 = vmatpush3.bf16.msra.mxu1 %v1723_v20 }
 0x121   :  { %1387 = vmatprep.subr.bf16.mxu1 %v1620_v0 }
 0x124   :  { %1389 = vmatpush3.bf16.msra.mxu1 %v1729_v23 }
 0x125   :  { %1390 = vmatprep.subr.bf16.mxu1 %v1620_v0 }
 0x128   :  { %1392 = vmatpush3.bf16.msra.mxu1 %v1734_v26 }
 0x129   :  { %1393 = vmatprep.subr.bf16.mxu1 %v1620_v0 }
 0x12c   :  { %1395 = vmatpush3.bf16.msra.mxu1 %v1740_v30 }
 0x12d   :  { %1420 = vmatprep.subr.bf16.mxu1 %v1620_v0 }
 0x1e2   :  { %v292_v43 = vpop.f32.mrb[0].mxu1 }
 0x1e3   :  { %v296_v44 = vadd.f32 %v292_v43, %v166_v42  ;;  %v1074_v45 = vpop.f32.mrb[1].mxu1  ;;  %v1511_v42 = vpack.c.bf16 %v756_v41, %v755_v40  ;;  %v757_v43 = vld [vmem:[#allocation6 + $0x70] sm:$0xff] }
 0x1e5   :  { %1526 = vtanh.f32 %v296_v44  ;;  %v758_v44 = vld [vmem:[#allocation6 + $0x78] sm:$0xff] }
 0x1e6   :  { %v1514_v45 = vpack.c.bf16 %v758_v44, %v757_v43 }
 0x1ef   :  { %v1527_v46 = vpop.eup %1526 }
 0x1f0   :  { %1108 = vmatmul.mubr.f32.vlgmr.msra.gmra.mrb[8].mxu0 %v1527_v46  ;;  %v298_v57 = vadd.f32 %v1527_v46, %v1759_v36  ;;  %v1505_v36 = vpack.c.bf16 %v752_v35, %v751_v34  ;;  %v196_v46 = vadd.f32 %v1823_v51, %v1756_v32 }
 0x1f1   :  { %1398 = vmatpush3.bf16.msra.mxu0 %v1694_v7  ;;  %1177 = vmatprep.mubr.msk.f32.mxu0 %vm1621_vm1, %v1622_v29 }
 0x1f2   :  { %1399 = vmatprep.subr.bf16.mxu0 %v1620_v0 }
 0x1f5   :  { %1401 = vmatpush3.bf16.msra.mxu0 %v1700_v11 }
 0x1f6   :  { %1402 = vmatprep.subr.bf16.mxu0 %v1620_v0 }
 0x1f9   :  { %1404 = vmatpush3.bf16.msra.mxu0 %v1706_v14 }
 0x1fa   :  { %1405 = vmatprep.subr.bf16.mxu0 %v1620_v0 }
 0x1fd   :  { %1407 = vmatpush3.bf16.msra.mxu0 %v1712_v17 }
 0x1fe   :  { %1408 = vmatprep.subr.bf16.mxu0 %v1620_v0 }
 0x201   :  { %1410 = vmatpush3.bf16.msra.mxu0 %v1723_v20 }
 0x202   :  { %1411 = vmatprep.subr.bf16.mxu0 %v1620_v0 }
 0x205   :  { %1413 = vmatpush3.bf16.msra.mxu0 %v1729_v23 }
 0x206   :  { %1414 = vmatprep.subr.bf16.mxu0 %v1620_v0 }
 0x209   :  { %1416 = vmatpush3.bf16.msra.mxu0 %v1734_v26 }
 0x20a   :  { %1417 = vmatprep.subr.bf16.mxu0 %v1620_v0 }
 0x20d   :  { %1419 = vmatpush3.bf16.msra.mxu0 %v1740_v30 }
 0x20e   :  { %1444 = vmatprep.subr.bf16.mxu0 %v1620_v0 }
 0x2c3   :  { %v366_v54 = vpop.f32.mrb[8].mxu0 }
 0x2c4   :  { %v370_v55 = vadd.f32 %v366_v54, %v171_v53  ;;  %v1109_v56 = vpop.f32.mrb[9].mxu0  ;;  %v762_v53 = vlaneseq }
 0x2c6   :  { %1528 = vtanh.f32 %v370_v55  ;;  %v763_v54 = vshrl.u32 %v762_v53, 7  ;;  %v759_v55 = vld [vmem:[%s1919_s5] sm:$0x1]  ;;  %s1623_s5 = smov [#allocation8]  }
 0x2c7   :  { %v760_v56 = vmul.f32 8.0, %v759_v55  ;;  %s859_s18 = sshll.u32 %s1623_s5, 4  ;;  %s860_s18 = int_to_ptr.vmem [resolvable:$true] %s859_s18 }
 0x2c8   :  { %s1588_s19 = scalar_lea.vmem %s860_s18, 128  ;;  %p1593_p3 = scmp.lt.s32.totalorder %s860_s18, %s860_s18 }
 0x2c9   :  { %p1589_p2 = scmp.ne.s32.totalorder %s860_s18, %s1588_s19  ;;  %p1594_p4 = scmp.lt.s32.totalorder %s1588_s19, %s1588_s19 }
 0x2cb   :  { %p1595_p5 = por %p1594_p4, %p1593_p3 }
 0x2cd   :  { %p1596_p6 = pnand %p1595_p5, %p1589_p2 }
 0x2d0   :  { %v1529_v58 = vpop.eup %1528 }
 0x2d1   :  { %v372_v59 = vadd.f32 %v1529_v58, %v298_v57  ;;  %1143 = vmatmul.mubr.f32.vlgmr.msra.gmra.mrb[2].mxu1 %v1529_v58  ;;  %v764_v57 = vsub.s32 0, %v763_v54 }
 0x2d2   :  { %1422 = vmatpush3.bf16.msra.mxu1 %v1694_v7  ;;  %1212 = vmatprep.mubr.msk.f32.mxu1 %vm1621_vm1, %v1622_v29 }
 0x2d3   :  { %1423 = vmatprep.subr.bf16.mxu1 %v1620_v0  ;;  %v765_v58 = vrot.slane %v760_v56, %v764_v57 }
 0x2d6   :  { %1425 = vmatpush3.bf16.msra.mxu1 %v1700_v11 }
 0x2d7   :  { %1426 = vmatprep.subr.bf16.mxu1 %v1620_v0 }
 0x2da   :  { %1428 = vmatpush3.bf16.msra.mxu1 %v1706_v14 }
 0x2db   :  { %1429 = vmatprep.subr.bf16.mxu1 %v1620_v0 }
 0x2de   :  { %1431 = vmatpush3.bf16.msra.mxu1 %v1712_v17 }
 0x2df   :  { %1432 = vmatprep.subr.bf16.mxu1 %v1620_v0 }
 0x2e2   :  { %1434 = vmatpush3.bf16.msra.mxu1 %v1723_v20 }
 0x2e3   :  { %1435 = vmatprep.subr.bf16.mxu1 %v1620_v0 }
 0x2e6   :  { %1437 = vmatpush3.bf16.msra.mxu1 %v1729_v23 }
 0x2e7   :  { %1438 = vmatprep.subr.bf16.mxu1 %v1620_v0 }
 0x2ea   :  { %1440 = vmatpush3.bf16.msra.mxu1 %v1734_v26 }
 0x2eb   :  { %1441 = vmatprep.subr.bf16.mxu1 %v1620_v0 }
 0x2ee   :  { %1443 = vmatpush3.bf16.msra.mxu1 %v1740_v30 }
 0x2ef   :  { %1468 = vmatprep.subr.bf16.mxu1 %v1620_v0 }
 0x3a4   :  { %v440_v61 = vpop.f32.mrb[2].mxu1 }
 0x3a5   :  { %v444_v62 = vadd.f32 %v440_v61, %v176_v60  ;;  %v1144_v63 = vpop.f32.mrb[3].mxu1 }
 0x3a7   :  { %1530 = vtanh.f32 %v444_v62 }
 0x3b1   :  { %v1531_v1 = vpop.eup %1530 }
 0x3b2   :  { %v446_v2 = vadd.f32 %v1531_v1, %v372_v59  ;;  %1178 = vmatmul.mubr.f32.vlgmr.msra.gmra.mrb[10].mxu0 %v1531_v1 }
 0x3b3   :  { %1446 = vmatpush3.bf16.msra.mxu0 %v1694_v7  ;;  %1247 = vmatprep.mubr.msk.f32.mxu0 %vm1621_vm1, %v1622_v29 }
 0x3b4   :  { %1447 = vmatprep.subr.bf16.mxu0 %v1620_v0 }
 0x3b7   :  { %1449 = vmatpush3.bf16.msra.mxu0 %v1700_v11 }
 0x3b8   :  { %1450 = vmatprep.subr.bf16.mxu0 %v1620_v0 }
 0x3bb   :  { %1452 = vmatpush3.bf16.msra.mxu0 %v1706_v14 }
 0x3bc   :  { %1453 = vmatprep.subr.bf16.mxu0 %v1620_v0 }
 0x3bf   :  { %1455 = vmatpush3.bf16.msra.mxu0 %v1712_v17 }
 0x3c0   :  { %1456 = vmatprep.subr.bf16.mxu0 %v1620_v0 }
 0x3c3   :  { %1458 = vmatpush3.bf16.msra.mxu0 %v1723_v20 }
 0x3c4   :  { %1459 = vmatprep.subr.bf16.mxu0 %v1620_v0 }
 0x3c7   :  { %1461 = vmatpush3.bf16.msra.mxu0 %v1729_v23 }
 0x3c8   :  { %1462 = vmatprep.subr.bf16.mxu0 %v1620_v0 }
 0x3cb   :  { %1464 = vmatpush3.bf16.msra.mxu0 %v1734_v26 }
 0x3cc   :  { %1465 = vmatprep.subr.bf16.mxu0 %v1620_v0 }
 0x3cf   :  { %1467 = vmatpush3.bf16.msra.mxu0 %v1740_v30 }
 0x3d0   :  { %1492 = vmatprep.subr.bf16.mxu0 %v1620_v0 }
 0x485   :  { %v514_v4 = vpop.f32.mrb[10].mxu0 }
 0x486   :  { %v518_v5 = vadd.f32 %v514_v4, %v181_v3  ;;  %v1179_v6 = vpop.f32.mrb[11].mxu0 }
 0x488   :  { %1532 = vtanh.f32 %v518_v5 }
 0x492   :  { %v1533_v8 = vpop.eup %1532 }
 0x493   :  { %v520_v9 = vadd.f32 %v1533_v8, %v446_v2  ;;  %1213 = vmatmul.mubr.f32.vlgmr.msra.gmra.mrb[4].mxu1 %v1533_v8 }
 0x494   :  { %1470 = vmatpush3.bf16.msra.mxu1 %v1694_v7  ;;  %1282 = vmatprep.mubr.msk.f32.mxu1 %vm1621_vm1, %v1622_v29  ;;  %v186_v7 = vadd.f32 %v1821_v49, %v1756_v32 }
 0x495   :  { %1471 = vmatprep.subr.bf16.mxu1 %v1620_v0 }
 0x498   :  { %1473 = vmatpush3.bf16.msra.mxu1 %v1700_v11 }
 0x499   :  { %1474 = vmatprep.subr.bf16.mxu1 %v1620_v0 }
 0x49c   :  { %1476 = vmatpush3.bf16.msra.mxu1 %v1706_v14 }
 0x49d   :  { %1477 = vmatprep.subr.bf16.mxu1 %v1620_v0 }
 0x4a0   :  { %1479 = vmatpush3.bf16.msra.mxu1 %v1712_v17  ;;  %v745_v17 = vld [vmem:[#allocation6 + $0x10] sm:$0xff] }
 0x4a1   :  { %1480 = vmatprep.subr.bf16.mxu1 %v1620_v0 }
 0x4a4   :  { %1482 = vmatpush3.bf16.msra.mxu1 %v1723_v20  ;;  %v1496_v20 = vpack.c.bf16 %v746_v19, %v745_v17 }
 0x4a5   :  { %1483 = vmatprep.subr.bf16.mxu1 %v1620_v0 }
 0x4a8   :  { %1485 = vmatpush3.bf16.msra.mxu1 %v1729_v23  ;;  %v1499_v23 = vpack.c.bf16 %v748_v22, %v747_v21 }
 0x4a9   :  { %1486 = vmatprep.subr.bf16.mxu1 %v1620_v0 }
 0x4ac   :  { %1488 = vmatpush3.bf16.msra.mxu1 %v1734_v26  ;;  %v1502_v26 = vpack.c.bf16 %v750_v25, %v749_v24 }
 0x4ad   :  { %1489 = vmatprep.subr.bf16.mxu1 %v1620_v0 }
 0x4b0   :  { %1491 = vmatpush3.bf16.msra.mxu1 %v1740_v30 }
 0x566   :  { %v588_v10 = vpop.f32.mrb[4].mxu1 }
 0x567   :  { %v592_v11 = vadd.f32 %v588_v10, %v186_v7  ;;  %v1214_v12 = vpop.f32.mrb[5].mxu1 }
 0x569   :  { %1534 = vtanh.f32 %v592_v11 }
 0x573   :  { %v1535_v13 = vpop.eup %1534 }
 0x574   :  { %1248 = vmatmul.mubr.f32.vlgmr.msra.gmra.mrb[12].mxu0 %v1535_v13  ;;  %v594_v14 = vadd.f32 %v1535_v13, %v520_v9 }
 0x575   :  { %1317 = vmatprep.mubr.msk.f32.mxu0 %vm1621_vm1, %v1622_v29  ;;  %1494 = vmatpush3.bf16.msra.mxu0 %v1493_v18 }
 0x576   :  { %1495 = vmatprep.subr.bf16.mxu0 %v1620_v0 }
 0x579   :  { %1497 = vmatpush3.bf16.msra.mxu0 %v1496_v20 }
 0x57a   :  { %1498 = vmatprep.subr.bf16.mxu0 %v1620_v0 }
 0x57d   :  { %1500 = vmatpush3.bf16.msra.mxu0 %v1499_v23 }
 0x57e   :  { %1501 = vmatprep.subr.bf16.mxu0 %v1620_v0 }
 0x581   :  { %1503 = vmatpush3.bf16.msra.mxu0 %v1502_v26 }
 0x582   :  { %1504 = vmatprep.subr.bf16.mxu0 %v1620_v0 }
 0x585   :  { %1506 = vmatpush3.bf16.msra.mxu0 %v1505_v36 }
 0x586   :  { %1507 = vmatprep.subr.bf16.mxu0 %v1620_v0 }
 0x589   :  { %1509 = vmatpush3.bf16.msra.mxu0 %v1508_v39 }
 0x58a   :  { %1510 = vmatprep.subr.bf16.mxu0 %v1620_v0 }
 0x58d   :  { %1512 = vmatpush3.bf16.msra.mxu0 %v1511_v42 }
 0x58e   :  { %1513 = vmatprep.subr.bf16.mxu0 %v1620_v0  ;;  %v838_v0 = vand.u32 127, %v762_v53 }
 0x590   :  { %vm839_vm2 = vcmp.lt.s32.totalorder %v838_v0, 5 }
 0x591   :  { %1515 = vmatpush3.bf16.msra.mxu0 %v1514_v45 }
 0x647   :  { %v662_v28 = vpop.f32.mrb[12].mxu0 }
 0x648   :  { %v666_v29 = vadd.f32 %v662_v28, %v191_v27  ;;  %v1249_v30 = vpop.f32.mrb[13].mxu0 }
 0x64a   :  { %1536 = vtanh.f32 %v666_v29 }
 0x654   :  { %v1537_v31 = vpop.eup %1536 }
 0x655   :  { %1283 = vmatmul.mubr.f32.vlgmr.msra.gmra.mrb[6].mxu1 %v1537_v31  ;;  %v668_v33 = vadd.f32 %v1537_v31, %v594_v14 }
 0x728   :  { %v736_v47 = vpop.f32.mrb[6].mxu1 }
 0x729   :  { %v740_v48 = vadd.f32 %v736_v47, %v196_v46  ;;  %v1284_v49 = vpop.f32.mrb[7].mxu1 }
 0x72b   :  { %1538 = vtanh.f32 %v740_v48 }
 0x735   :  { %v1539_v50 = vpop.eup %1538 }
 0x736   :  { %v742_v52 = vadd.f32 %v1539_v50, %v668_v33 }
 0x738   :  { %1318 = vmatmul.mubr.f32.vlgmr.msra.gmra.mrb[14].mxu0 %v742_v52 }
 0x80b   :  { %v833_v59 = vpop.f32.mrb[14].mxu0 }
 0x80c   :  { %v834_v32 = vadd.f32 %v833_v59, %v765_v58  ;;  %v1319_v51 = vpop.f32.mrb[15].mxu0 }
 0x80e   :  { %v840_v60 = vsel %vm839_vm2, %v834_v32, -1e+30 }
 0x80f   :  { %841 = vmax.xlane.f32.xlu0 %v840_v60 }
 0x89c   :  { %v842_v61 = vpop.xlane.xlu0 %841 }
 0x89d   :  { %v843_v62 = vsub.f32 %v840_v60, %v842_v61 }
 0x89f   :  { %v844_v63 = vmul.f32 1.442695, %v843_v62 }
 0x8a1   :  { %1540 = vpow2.f32 %v844_v63 }
 0x8ab   :  { %v1541_v1 = vpop.eup %1540 }
 0x8ac   :  { %846 = vadd.xlane.f32.xlu0 %v1541_v1 }
 0x939   :  { %v847_v2 = vpop.xlane.xlu0 %846 }
 0x93a   :  { %1542 = vlog2.f32 %v847_v2 }
 0x944   :  { %v1543_v3 = vpop.eup %1542 }
 0x945   :  { %v849_v4 = vmul.f32 0.6931472, %v1543_v3 }
 0x947   :  { %v850_v5 = vadd.f32 %v849_v4, %v842_v61 }
 0x949   :  { %v851_v6 = vsub.f32 %v840_v60, %v850_v5 }
 0x94b   :  { %852 = vst [vmem:[#allocation8] sm:$0xff] %v851_v6 }
 0x94c   :  { %1599 = shalt.err (!%p1596_p6)
}
 0x94d   :  { %s1600_s21 = scalar_lea.hbm %s1920_s6, 128 }
 0x94e   :  { %p1601_p7 = scmp.ne.s32.totalorder %s1920_s6, %s1600_s21  ;;  %p1604_p8 = scmp.lt.u32.totalorder %s1600_s21, %s1920_s6 }
 0x950   :  { %p1606_p9 = pnand %p1604_p8, %p1601_p7 }
 0x952   :  { %1609 = shalt.err (!%p1606_p9)
}
 0x953   :  { %862 = dma.vmem_to_hbm [thread:$0]  %s860_s18, 128, %s1920_s6, [#allocation5]  }
 0x954   :  { %1614 = dma.done.wait [#allocation5], 128  }
 0x955   :  { %1615 = vsyncadd [#allocation5], 4294967168 }
 0x956   :  { %866 = vsyncpa [#allocation4], 1 }
 0x957   :  { %867 = vsyncpa [#allocation7], 1 }
 0x958   :  { %868 = vsyncpa [#allocation5], 1 }

</bundles_post_ra>
